<compile_context>
chip_gen: v6e
topology: v6e:2x2x1
jax: 0.10.0
libtpu: 0.0.40
codegen_flags: <defaults>
</compile_context>

<pallas_src>
import functools

import jax
import jax.numpy as jnp
from jax.experimental import pallas as pl
from jax.experimental.pallas import tpu as pltpu


LANE = 128                      # lane width / feature padding
XW_RESIDENT_BYTES = 8 << 20     # keep full XW in VMEM when <= 8 MiB (safe even on v7x)


def _round_up(x, m):
    return (x + m - 1) // m * m


def _pad2(x, rows, cols):
    return jnp.pad(x, ((0, rows - x.shape[0]), (0, cols - x.shape[1])))


def _pick_divisor_tile(n_pad, candidates):
    for t in candidates:
        if n_pad % t == 0:
            return t
    return 128


def _vmem_limit(tile_bytes):
    # double-buffered pipeline tiles + headroom; ceiling 48 MiB (< v7x's 64 MiB physical VMEM)
    return int(min(max(2 * tile_bytes + (8 << 20), 16 << 20), 48 << 20))


# ---------------------------------------------------------------------------
# Kernel 1: feature transform  XW_scaled = d_inv_sqrt * (X @ W)
#   (row-tiled, W resident in VMEM; D^-1/2 "column" scaling fused into the store)
# ---------------------------------------------------------------------------
def _linear_kernel(x_ref, w_ref, d_ref, o_ref):
    xw = jnp.dot(x_ref[...], w_ref[...], preferred_element_type=jnp.float32)
    o_ref[...] = (xw * d_ref[...]).astype(o_ref.dtype)


def _linear(x, w, d, *, tile, out_dtype):
    n_pad, f_in = x.shape
    f_out = w.shape[1]
    grid = (n_pad // tile,)

    tile_bytes = (
        tile * f_in * x.dtype.itemsize                      # x tile (bf16)
        + f_in * f_out * w.dtype.itemsize                   # resident W (bf16)
        + tile * d.dtype.itemsize                           # d_inv_sqrt tile
        + tile * f_out * jnp.dtype(out_dtype).itemsize      # out tile
    )

    return pl.pallas_call(
        _linear_kernel,
        out_shape=jax.ShapeDtypeStruct((n_pad, f_out), out_dtype),
        grid_spec=pltpu.PrefetchScalarGridSpec(
            num_scalar_prefetch=0,
            grid=grid,
            in_specs=[
                pl.BlockSpec((tile, f_in), lambda i: (i, 0)),
                pl.BlockSpec((f_in, f_out), lambda i: (0, 0)),
                pl.BlockSpec((tile, 1), lambda i: (i, 0)),
            ],
            out_specs=pl.BlockSpec((tile, f_out), lambda i: (i, 0)),
        ),
        compiler_params=pltpu.CompilerParams(
            dimension_semantics=("parallel",),
            vmem_limit_bytes=_vmem_limit(tile_bytes),
        ),
    )(x, w, d)


# ---------------------------------------------------------------------------
# Kernel 2: aggregation  out = act(d_row * (A_bin @ XW_scaled) + b)
#   grid = (row tiles [parallel], K tiles [arbitrary, last])
#   A_bin stored int8 in HBM, upcast to bf16 in-kernel (v7x-safe MXU operand).
#   f32 accumulator in VMEM scratch; bias / row-scaling / activation fused in finalize.
# ---------------------------------------------------------------------------
def _aggregate_kernel(a_ref, xw_ref, d_ref, b_ref, o_ref, acc_ref, *,
                      activation, valid_cols, xw_resident, tile_k):
    k = pl.program_id(1)

    @pl.when(k == 0)
    def _():
        acc_ref[...] = jnp.zeros_like(acc_ref)

    # int8 -> f32 -> bf16 (cheap VPU work, hides under the halved A DMA)
    a_tile = a_ref[...].astype(jnp.float32).astype(jnp.bfloat16)

    if xw_resident:
        start = pl.multiple_of(k * tile_k, tile_k)
        xw_tile = xw_ref[pl.ds(start, tile_k), :]
    else:
        xw_tile = xw_ref[...]

    acc_ref[...] += jnp.dot(a_tile, xw_tile, preferred_element_type=jnp.float32)

    @pl.when(k == pl.num_programs(1) - 1)
    def _():
        # D^-1/2 row scaling (normalization moved out of A) + bias; f32 epilogue (v5e-safe).
        h = acc_ref[...] * d_ref[...] + b_ref[...]
        if activation == "relu":
            o_ref[...] = jnp.maximum(h, 0.0).astype(o_ref.dtype)
        else:  # masked log_softmax over the valid (un-padded) feature columns
            lane = jax.lax.broadcasted_iota(jnp.int32, h.shape, 1)
            mask = lane < valid_cols
            hm = jnp.where(mask, h, -jnp.inf)
            m = jnp.max(hm, axis=1, keepdims=True)
            z = hm - m
            ez = jnp.where(mask, jnp.exp(z), 0.0)
            lse = jnp.log(jnp.sum(ez, axis=1, keepdims=True))
            o_ref[...] = (z - lse).astype(o_ref.dtype)


def _aggregate(a, xw, d, b, *, activation, valid_cols, out_dtype, tile_n, tile_k):
    n_pad = a.shape[0]
    f_out = xw.shape[1]
    grid = (n_pad // tile_n, n_pad // tile_k)

    xw_bytes = xw.size * xw.dtype.itemsize
    xw_resident = xw_bytes <= XW_RESIDENT_BYTES
    if xw_resident:
        xw_spec = pl.BlockSpec((n_pad, f_out), lambda i, k: (0, 0))   # DMA'd once, stays in VMEM
        xw_tile_bytes = xw_bytes
    else:
        xw_spec = pl.BlockSpec((tile_k, f_out), lambda i, k: (k, 0))
        xw_tile_bytes = tile_k * f_out * xw.dtype.itemsize

    tile_bytes = (
        tile_n * tile_k * a.dtype.itemsize                  # A tile (int8)
        + xw_tile_bytes                                     # XW (resident or streamed tile)
        + tile_n * d.dtype.itemsize                         # d_inv_sqrt row tile
        + f_out * b.dtype.itemsize                          # bias
        + tile_n * f_out * jnp.dtype(out_dtype).itemsize    # out tile
        + tile_n * f_out * 4                                # f32 accumulator
    )

    kernel = functools.partial(
        _aggregate_kernel, activation=activation, valid_cols=valid_cols,
        xw_resident=xw_resident, tile_k=tile_k,
    )

    return pl.pallas_call(
        kernel,
        out_shape=jax.ShapeDtypeStruct((n_pad, f_out), out_dtype),
        grid_spec=pltpu.PrefetchScalarGridSpec(
            num_scalar_prefetch=0,
            grid=grid,
            in_specs=[
                pl.BlockSpec((tile_n, tile_k), lambda i, k: (i, k)),
                xw_spec,
                pl.BlockSpec((tile_n, 1), lambda i, k: (i, 0)),
                pl.BlockSpec((1, f_out), lambda i, k: (0, 0)),
            ],
            out_specs=pl.BlockSpec((tile_n, f_out), lambda i, k: (i, 0)),
            scratch_shapes=[pltpu.VMEM((tile_n, f_out), jnp.float32)],
        ),
        compiler_params=pltpu.CompilerParams(
            dimension_semantics=("parallel", "arbitrary"),
            vmem_limit_bytes=_vmem_limit(tile_bytes),
        ),
    )(a, xw, d, b)


# ---------------------------------------------------------------------------
# Plain-JAX glue: binary adjacency (A + I, deduped) as int8 + D^-1/2 vector
# ---------------------------------------------------------------------------
def binary_adjacency(edge_index, num_nodes):
    """int8 binary (A + I) with self loops set exactly once, plus d_inv_sqrt column."""
    src = edge_index[0]
    dst = edge_index[1]
    a = jnp.zeros((num_nodes, num_nodes), jnp.int8).at[dst, src].set(1)
    idx = jnp.arange(num_nodes)
    a = a.at[idx, idx].set(1)                       # add_remaining_self_loops: diag exactly 1
    deg = jnp.sum(a, axis=1, dtype=jnp.float32)     # deg >= 1 (self loop)
    d_inv_sqrt = jax.lax.rsqrt(deg)
    return a, d_inv_sqrt[:, None]


# ---------------------------------------------------------------------------
# Forward pass:  conv1 -> relu -> dropout(eval=identity) -> conv2 -> log_softmax
# ---------------------------------------------------------------------------
def vanilla_gcn_forward(x, edge_index, params):
    w1, b1, w2, b2 = params
    n, f_in = x.shape
    hid1 = w1.shape[1]
    hid2 = w2.shape[1]

    n_pad = _round_up(n, 128)
    tile_n = _pick_divisor_tile(n_pad, (512, 256, 128))          # aggregation row/K tile
    tile_lin = _pick_divisor_tile(n_pad, (1024, 512, 256, 128))  # linear stage row block
    f_in_pad = _round_up(f_in, LANE)
    h1_pad = _round_up(hid1, LANE)
    h2_pad = _round_up(hid2, LANE)

    a_bin, d_inv_sqrt = binary_adjacency(edge_index, n)
    a_pad = _pad2(a_bin, n_pad, n_pad)                           # int8, zeros in padding
    d_pad = _pad2(d_inv_sqrt, n_pad, 1)                          # padded rows scale -> 0
    x_pad = _pad2(x, n_pad, f_in_pad).astype(jnp.bfloat16)       # bf16 MXU operands
    w1_p = _pad2(w1, f_in_pad, h1_pad).astype(jnp.bfloat16)
    b1_p = _pad2(b1, 1, h1_pad).astype(jnp.float32)
    w2_p = _pad2(w2, h1_pad, h2_pad).astype(jnp.bfloat16)
    b2_p = _pad2(b2, 1, h2_pad).astype(jnp.float32)

    # NOTE: padded rows/cols of a_pad and d_pad are zero, so padded rows (which do pick up
    # the broadcast bias in the finalize) can never contaminate valid rows in the next layer.

    # ---- layer 1: GCNConv(input_size -> 16) + relu ----
    xw1 = _linear(x_pad, w1_p, d_pad, tile=tile_lin, out_dtype=jnp.bfloat16)  # d * (X @ W1)
    h1 = _aggregate(a_pad, xw1, d_pad, b1_p, activation="relu",
                    valid_cols=hid1, out_dtype=jnp.bfloat16,
                    tile_n=tile_n, tile_k=tile_n)
    # dropout: module evaluated with training=False -> identity

    # ---- layer 2: GCNConv(16 -> hidden_size) + log_softmax(dim=1) ----
    xw2 = _linear(h1, w2_p, d_pad, tile=tile_lin, out_dtype=jnp.bfloat16)     # d * (H1 @ W2)
    out = _aggregate(a_pad, xw2, d_pad, b2_p, activation="log_softmax",
                     valid_cols=hid2, out_dtype=jnp.float32,
                     tile_n=tile_n, tile_k=tile_n)

    return out[:n, :hid2]


def init_params(key, input_size, hidden_size):
    k1, k2 = jax.random.split(key)

    def glorot(k, fan_in, fan_out):
        limit = jnp.sqrt(6.0 / (fan_in + fan_out))
        return jax.random.uniform(k, (fan_in, fan_out), jnp.float32, -limit, limit)

    w1 = glorot(k1, input_size, 16)
    b1 = jnp.zeros((1, 16), jnp.float32)
    w2 = glorot(k2, 16, hidden_size)
    b2 = jnp.zeros((1, hidden_size), jnp.float32)
    return (w1, b1, w2, b2)


def _reference(x, edge_index, params):
    """Pure-JAX f32 reference of the same forward pass (dense normalized adjacency)."""
    w1, b1, w2, b2 = params
    n = x.shape[0]
    src, dst = edge_index[0], edge_index[1]
    a = jnp.zeros((n, n), jnp.float32).at[dst, src].set(1.0)
    idx = jnp.arange(n)
    a = a.at[idx, idx].set(1.0)
    d = jax.lax.rsqrt(jnp.sum(a, axis=1))
    a_hat = a * d[:, None] * d[None, :]
    h = jnp.maximum(a_hat @ (x @ w1) + b1, 0.0)
    z = a_hat @ (h @ w2) + b2
    return jax.nn.log_softmax(z, axis=1)


if __name__ == "__main__":
    key = jax.random.PRNGKey(0)
    k_x, k_e, k_p = jax.random.split(key, 3)

    num_nodes = 32
    input_size = 8
    hidden_size = 8
    num_edges = 64

    # data['traffic'] -> node features [N, input_size]
    x = jax.random.normal(k_x, (num_nodes, input_size), jnp.float32)
    # data['path-to-queue'] -> edge_index [2, E]
    edge_index = jax.random.randint(k_e, (2, num_edges), 0, num_nodes, jnp.int32)

    params = init_params(k_p, input_size, hidden_size)

    out = vanilla_gcn_forward(x, edge_index, params)
    out = jax.block_until_ready(out)

    assert out.shape == (num_nodes, hidden_size)
    # rows of log_softmax should exp-sum to 1
    assert jnp.allclose(jnp.sum(jnp.exp(out), axis=1), 1.0, atol=1e-3)
    # loose check against the f32 pure-JAX reference (kernel uses bf16 operands)
    ref = _reference(x, edge_index, params)
    assert jnp.max(jnp.abs(out - ref)) < 7e-2
    print("KERNEL_OK")
</pallas_src>

<mosaic_0001>
module attributes {stable_mosaic.version = 11 : i64} {
  func.func @_linear_kernel(%arg0: i32, %arg1: memref<128x128xbf16, #tpu.memory_space<vmem>>, %arg2: memref<128x128xbf16, #tpu.memory_space<vmem>>, %arg3: memref<128x1xf32, #tpu.memory_space<vmem>>, %arg4: memref<128x128xbf16, #tpu.memory_space<vmem>>) attributes {dimension_semantics = [#tpu.dimension_semantics<parallel>], iteration_bounds = array<i64: 1>, scalar_prefetch = 0 : i64, scratch_operands = 0 : i64, tpu.core_type = #tpu.core_type<tc>, window_params = [{transform_indices = @transform_0, window_bounds = array<i64: 128, 128>}, {pipeline_mode = #tpu.pipeline_mode<synchronous>, transform_indices = @transform_1, window_bounds = array<i64: 128, 128>}, {transform_indices = @transform_2, window_bounds = array<i64: 128, 1>}, {transform_indices = @transform_3, window_bounds = array<i64: 128, 128>}]} {
    %c0 = arith.constant 0 : index
    %c0_0 = arith.constant 0 : index
    %0 = vector.load %arg1[%c0, %c0_0] : memref<128x128xbf16, #tpu.memory_space<vmem>>, vector<128x128xbf16>
    %c0_1 = arith.constant 0 : index
    %c0_2 = arith.constant 0 : index
    %1 = vector.load %arg2[%c0_1, %c0_2] : memref<128x128xbf16, #tpu.memory_space<vmem>>, vector<128x128xbf16>
    %cst = arith.constant dense<0.000000e+00> : vector<128x128xf32>
    %2 = tpu.matmul %0, %1, %cst {dimension_numbers = #tpu.dot_dimension_numbers<[1], [0], [0], [1], [0, 0, 1, 1], [], []>} : vector<128x128xbf16>, vector<128x128xbf16>, vector<128x128xf32> -> vector<128x128xf32>
    %c0_3 = arith.constant 0 : index
    %c0_4 = arith.constant 0 : index
    %3 = vector.load %arg3[%c0_3, %c0_4] : memref<128x1xf32, #tpu.memory_space<vmem>>, vector<128x1xf32>
    %4 = vector.broadcast %3 : vector<128x1xf32> to vector<128x128xf32>
    %5 = arith.mulf %2, %4 : vector<128x128xf32>
    %6 = arith.truncf %5 : vector<128x128xf32> to vector<128x128xbf16>
    %c0_5 = arith.constant 0 : index
    %c0_6 = arith.constant 0 : index
    %7 = vector.load %arg4[%c0_5, %c0_6] : memref<128x128xbf16, #tpu.memory_space<vmem>>, vector<128x128xbf16>
    tpu.vector_store %arg4[%c0_5, %c0_6], %6 {strides = array<i32>} : memref<128x128xbf16, #tpu.memory_space<vmem>>, vector<128x128xbf16>,
    return
  }
  func.func @transform_0(%arg0: i32) -> (i32, i32) {
    %c0_i32 = arith.constant 0 : i32
    %c0_i32_0 = arith.constant 0 : i32
    return %arg0, %c0_i32 : i32, i32
  }
  func.func @transform_1(%arg0: i32) -> (i32, i32) {
    %c0_i32 = arith.constant 0 : i32
    %c0_i32_0 = arith.constant 0 : i32
    %c0_i32_1 = arith.constant 0 : i32
    return %c0_i32, %c0_i32_0 : i32, i32
  }
  func.func @transform_2(%arg0: i32) -> (i32, i32) {
    %c0_i32 = arith.constant 0 : i32
    %c0_i32_0 = arith.constant 0 : i32
    return %arg0, %c0_i32 : i32, i32
  }
  func.func @transform_3(%arg0: i32) -> (i32, i32) {
    %c0_i32 = arith.constant 0 : i32
    %c0_i32_0 = arith.constant 0 : i32
    return %arg0, %c0_i32 : i32, i32
  }
}

</mosaic_0001>

<bundles_post_ra>
// kernel: tpu_custom_call.1
= control target key start
LH: loop header
LB: loop body
LE: loop exit
PB: predicated region body
PF: predicated region fallthrough
CT: control target
= control target key end

     0   :  { %v652_v2 = vmov 0   ;;  %s775_s0 = inlined_call_operand.vmem [shape: bf16[128,128], index: 0, kind: input, shape index: {}]   ;;  %s776_s1 = inlined_call_operand.vmem [shape: bf16[128,128], index: 1, kind: input, shape index: {}]   ;;  %s777_s2 = inlined_call_operand.vmem [shape: f32[128,1], index: 2, kind: input, shape index: {}]   ;;  %s778_s3 = inlined_call_operand.hbm [shape: bf16[128,128], index: 3, kind: output, shape index: {}]  }
   0x1   :  { %v614_v0 = vld [vmem:[%s776_s1 + $0x38] sm:$0xff]   ;;  %v615_v1 = vld [vmem:[%s776_s1 + $0x30] sm:$0xff]   ;;  %613 = vset.pattern.permute.xlu1 %v652_v2  ;;  %612 = vset.pattern.permute.xlu0 %v652_v2  ;;  %v616_v3 = vld [vmem:[%s776_s1 + $0x28] sm:$0xff]  }
   0x2   :  { %560 = vmatprep.subr.bf16.mxu0 %v614_v0  ;;  %592 = vmatprep.subr.bf16.mxu1 %v614_v0  ;;  %v617_v4 = vld [vmem:[%s776_s1 + $0x20] sm:$0xff]   ;;  %v618_v7 = vld [vmem:[%s776_s1 + $0x18] sm:$0xff]   ;;  %v619_v8 = vld [vmem:[%s776_s1 + $0x10] sm:$0xff]  }
   0x3   :  { %561 = vmatpush3.bf16.msra.mxu0 %v614_v0  ;;  %600 = vmatpush3.bf16.msra.mxu1 %v614_v0  ;;  %v622_v5 = vld [vmem:[%s775_s0] sm:$0xff]   ;;  %v243_v9 = vld [vmem:[%s777_s2 + $0x10] sm:$0xff]  ;;  %v244_v11 = vld [vmem:[%s777_s2 + $0x18] sm:$0xff] }
   0x4   :  { %562 = vmatprep.subr.bf16.mxu0 %v615_v1  ;;  %593 = vmatprep.subr.bf16.mxu1 %v615_v1  ;;  %v623_v6 = vld [vmem:[%s775_s0 + $0x20] sm:$0xff]   ;;  %v242_v12 = vld [vmem:[%s777_s2 + $0x8] sm:$0xff] }
   0x5   :  { %576 = vmatprep.mubr.bf16.mxu0 %v622_v5  ;;  %584 = vmatprep.mubr.bf16.mxu1 %v623_v6  ;;  %v241_v10 = vld [vmem:[%s777_s2] sm:$0xff]  ;;  %v620_v13 = vld [vmem:[%s776_s1 + $0x8] sm:$0xff]  }
   0x6   :  { %269 = vperm.xlu1 %613, %v243_v9   ;;  %259 = vperm.xlu0 %612, %v241_v10  }
   0x7   :  { %563 = vmatpush3.bf16.msra.mxu0 %v615_v1  ;;  %601 = vmatpush3.bf16.msra.mxu1 %v615_v1 }
   0x8   :  { %564 = vmatprep.subr.bf16.mxu0 %v616_v3  ;;  %594 = vmatprep.subr.bf16.mxu1 %v616_v3 }
   0xa   :  { %274 = vperm.xlu1 %613, %v244_v11   ;;  %264 = vperm.xlu0 %612, %v242_v12  }
   0xb   :  { %565 = vmatpush3.bf16.msra.mxu0 %v616_v3  ;;  %602 = vmatpush3.bf16.msra.mxu1 %v616_v3 }
   0xc   :  { %566 = vmatprep.subr.bf16.mxu0 %v617_v4  ;;  %595 = vmatprep.subr.bf16.mxu1 %v617_v4 }
   0xf   :  { %567 = vmatpush3.bf16.msra.mxu0 %v617_v4  ;;  %603 = vmatpush3.bf16.msra.mxu1 %v617_v4 }
  0x10   :  { %568 = vmatprep.subr.bf16.mxu0 %v618_v7  ;;  %596 = vmatprep.subr.bf16.mxu1 %v618_v7 }
  0x13   :  { %569 = vmatpush3.bf16.msra.mxu0 %v618_v7  ;;  %604 = vmatpush3.bf16.msra.mxu1 %v618_v7 }
  0x14   :  { %570 = vmatprep.subr.bf16.mxu0 %v619_v8  ;;  %597 = vmatprep.subr.bf16.mxu1 %v619_v8 }
  0x15   :  { %8 = vsyncpa [#allocation3], 0  ;;  %v246_v14 = vld [vmem:[%s777_s2 + $0x28] sm:$0xff]  ;;  %v245_v15 = vld [vmem:[%s777_s2 + $0x20] sm:$0xff] }
  0x16   :  { %v621_v16 = vld [vmem:[%s776_s1] sm:$0xff]   ;;  %284 = vperm.xlu1 %613, %v246_v14   ;;  %279 = vperm.xlu0 %612, %v245_v15   ;;  %v248_v17 = vld [vmem:[%s777_s2 + $0x38] sm:$0xff]  ;;  %v247_v18 = vld [vmem:[%s777_s2 + $0x30] sm:$0xff] }
  0x17   :  { %571 = vmatpush3.bf16.msra.mxu0 %v619_v8  ;;  %605 = vmatpush3.bf16.msra.mxu1 %v619_v8  ;;  %v624_v19 = vld [vmem:[%s775_s0 + $0x8] sm:$0xff]   ;;  %v249_v22 = vld [vmem:[%s777_s2 + $0x40] sm:$0xff]  ;;  %v626_v23 = vld [vmem:[%s775_s0 + $0x10] sm:$0xff]  }
  0x18   :  { %572 = vmatprep.subr.bf16.mxu0 %v620_v13  ;;  %598 = vmatprep.subr.bf16.mxu1 %v620_v13  ;;  %v625_v20 = vld [vmem:[%s775_s0 + $0x28] sm:$0xff]   ;;  %v627_v24 = vld [vmem:[%s775_s0 + $0x30] sm:$0xff]   ;;  %v252_v25 = vld [vmem:[%s777_s2 + $0x58] sm:$0xff] }
  0x19   :  { %v250_v21 = vld [vmem:[%s777_s2 + $0x48] sm:$0xff]  ;;  %v251_v26 = vld [vmem:[%s777_s2 + $0x50] sm:$0xff]  ;;  %v628_v27 = vld [vmem:[%s775_s0 + $0x18] sm:$0xff]  }
  0x1a   :  { %294 = vperm.xlu1 %613, %v248_v17   ;;  %289 = vperm.xlu0 %612, %v247_v18   ;;  %v629_v28 = vld [vmem:[%s775_s0 + $0x38] sm:$0xff]   ;;  %v254_v29 = vld [vmem:[%s777_s2 + $0x68] sm:$0xff]  ;;  %v253_v30 = vld [vmem:[%s777_s2 + $0x60] sm:$0xff]  ;;  %s653_s0 = smov [#allocation2]  }
  0x1b   :  { %573 = vmatpush3.bf16.msra.mxu0 %v620_v13  ;;  %606 = vmatpush3.bf16.msra.mxu1 %v620_v13  ;;  %v256_v31 = vld [vmem:[%s777_s2 + $0x78] sm:$0xff]  ;;  %v255_v32 = vld [vmem:[%s777_s2 + $0x70] sm:$0xff]  ;;  %s438_s2 = sshll.u32 %s653_s0, 4  ;;  %s439_s2 = int_to_ptr.vmem [resolvable:$true] %s438_s2 }
  0x1c   :  { %574 = vmatprep.subr.bf16.mxu0 %v621_v16  ;;  %599 = vmatprep.subr.bf16.mxu1 %v621_v16  ;;  %s630_s21 = scalar_lea.vmem %s439_s2, 1024  ;;  %p635_p1 = scmp.lt.s32.totalorder %s439_s2, %s439_s2 }
  0x1d   :  { %p631_p0 = scmp.ne.s32.totalorder %s439_s2, %s630_s21  ;;  %p636_p2 = scmp.lt.s32.totalorder %s630_s21, %s630_s21 }
  0x1e   :  { %304 = vperm.xlu1 %613, %v250_v21   ;;  %299 = vperm.xlu0 %612, %v249_v22  }
  0x1f   :  { %575 = vmatpush3.bf16.msra.mxu0 %v621_v16  ;;  %607 = vmatpush3.bf16.msra.mxu1 %v621_v16  ;;  %p637_p3 = por %p636_p2, %p635_p1 }
  0x21   :  { %p638_p4 = pnand %p637_p3, %p631_p0 }
  0x22   :  { %577 = vmatmul.mubr.bf16.vlgmr.msra.gmra.mxu0 %v624_v19  ;;  %585 = vmatmul.mubr.bf16.vlgmr.msra.gmra.mxu1 %v625_v20 }
  0x23   :  { %580 = vmatprep.mubr.bf16.mxu0 %v626_v23  ;;  %588 = vmatprep.mubr.bf16.mxu1 %v627_v24 }
  0x24   :  { %314 = vperm.xlu1 %613, %v252_v25   ;;  %309 = vperm.xlu0 %612, %v251_v26  }
  0x28   :  { %324 = vperm.xlu1 %613, %v254_v29   ;;  %319 = vperm.xlu0 %612, %v253_v30  }
  0x2a   :  { %581 = vmatmul.mubr.bf16.gmra.mxu0 %v628_v27  ;;  %589 = vmatmul.mubr.bf16.gmra.mxu1 %v629_v28 }
  0x2c   :  { %334 = vperm.xlu1 %613, %v256_v31   ;;  %329 = vperm.xlu0 %612, %v255_v32  }
  0x81   :  { %v270_v33 = vpop.permute.xlu1 %269  ;;  %v260_v34 = vpop.permute.xlu0 %259 }
  0x85   :  { %v275_v35 = vpop.permute.xlu1 %274  ;;  %v265_v36 = vpop.permute.xlu0 %264 }
  0x91   :  { %v285_v37 = vpop.permute.xlu1 %284  ;;  %v280_v38 = vpop.permute.xlu0 %279 }
  0x95   :  { %v295_v39 = vpop.permute.xlu1 %294  ;;  %v290_v40 = vpop.permute.xlu0 %289 }
  0x99   :  { %v305_v41 = vpop.permute.xlu1 %304  ;;  %v300_v42 = vpop.permute.xlu0 %299 }
  0x9f   :  { %v315_v43 = vpop.permute.xlu1 %314  ;;  %v310_v44 = vpop.permute.xlu0 %309 }
  0xa3   :  { %v325_v51 = vpop.permute.xlu1 %324  ;;  %v320_v52 = vpop.permute.xlu0 %319 }
  0xa7   :  { %v335_v7 = vpop.permute.xlu1 %334  ;;  %v330_v8 = vpop.permute.xlu0 %329 }
  0xe2   :  { %v578_v45 = vpop.f32.mrf.mxu0  ;;  %v586_v46 = vpop.f32.mrf.mxu1 }
  0xe3   :  { %v339_v53 = vmul.f32 %v578_v45, %v270_v33  ;;  %v347_v54 = vmul.f32 %v586_v46, %v310_v44 }
  0xe4   :  { %v178_v47 = vpop.f32.mrf.mxu0  ;;  %v210_v48 = vpop.f32.mrf.mxu1 }
  0xe5   :  { %v337_v57 = vmul.f32 %v260_v34, %v178_v47  ;;  %v345_v58 = vmul.f32 %v300_v42, %v210_v48 }
  0xe6   :  { %v579_v49 = vpop.f32.mrf.mxu0  ;;  %v587_v50 = vpop.f32.mrf.mxu1 }
  0xe7   :  { %v340_v55 = vmul.f32 %v579_v49, %v275_v35  ;;  %v348_v56 = vmul.f32 %v587_v50, %v315_v43 }
  0xe8   :  { %v181_v59 = vpop.f32.mrf.mxu0  ;;  %v213_v60 = vpop.f32.mrf.mxu1 }
  0xe9   :  { %v505_v61 = vpack.c.bf16 %v340_v55, %v339_v53  ;;  %v525_v62 = vpack.c.bf16 %v348_v56, %v347_v54  ;;  %v338_v63 = vmul.f32 %v265_v36, %v181_v59  ;;  %v346_v0 = vmul.f32 %v305_v41, %v213_v60 }
  0xea   :  { %v582_v1 = vpop.f32.mrf.mxu0  ;;  %v590_v2 = vpop.f32.mrf.mxu1 }
  0xeb   :  { %537 = vst [vmem:[#allocation2 + $0x8] sm:$0xff] %v505_v61   ;;  %541 = vst [vmem:[#allocation2 + $0x28] sm:$0xff] %v525_v62   ;;  %v500_v3 = vpack.c.bf16 %v338_v63, %v337_v57  ;;  %v520_v4 = vpack.c.bf16 %v346_v0, %v345_v58  ;;  %v343_v11 = vmul.f32 %v582_v1, %v290_v40 }
  0xec   :  { %v194_v5 = vpop.f32.mrf.mxu0  ;;  %v226_v6 = vpop.f32.mrf.mxu1  ;;  %v351_v12 = vmul.f32 %v590_v2, %v330_v8 }
  0xed   :  { %501 = vst [vmem:[#allocation2] sm:$0xff] %v500_v3   ;;  %540 = vst [vmem:[#allocation2 + $0x20] sm:$0xff] %v520_v4   ;;  %v341_v15 = vmul.f32 %v280_v38, %v194_v5  ;;  %v349_v16 = vmul.f32 %v320_v52, %v226_v6 }
  0xee   :  { %v583_v9 = vpop.f32.mrf.mxu0  ;;  %v591_v10 = vpop.f32.mrf.mxu1 }
  0xef   :  { %v344_v13 = vmul.f32 %v583_v9, %v295_v39  ;;  %v352_v14 = vmul.f32 %v591_v10, %v335_v7 }
  0xf0   :  { %v197_v17 = vpop.f32.mrf.mxu0  ;;  %v229_v18 = vpop.f32.mrf.mxu1 }
  0xf1   :  { %v515_v19 = vpack.c.bf16 %v344_v13, %v343_v11  ;;  %v535_v20 = vpack.c.bf16 %v352_v14, %v351_v12  ;;  %v342_v21 = vmul.f32 %v285_v37, %v197_v17  ;;  %v350_v22 = vmul.f32 %v325_v51, %v229_v18 }
  0xf3   :  { %539 = vst [vmem:[#allocation2 + $0x18] sm:$0xff] %v515_v19   ;;  %543 = vst [vmem:[#allocation2 + $0x38] sm:$0xff] %v535_v20   ;;  %v510_v23 = vpack.c.bf16 %v342_v21, %v341_v15  ;;  %v530_v24 = vpack.c.bf16 %v350_v22, %v349_v16 }
  0xf5   :  { %538 = vst [vmem:[#allocation2 + $0x10] sm:$0xff] %v510_v23   ;;  %542 = vst [vmem:[#allocation2 + $0x30] sm:$0xff] %v530_v24  }
  0xf6   :  { %641 = shalt.err (!%p638_p4)
}
  0xf7   :  { %s654_s22 = smov 64   ;;  %s655_s1 = smov 4  }
  0xf8   :  { %444 = dma.vmem_to_hbm [thread:$0]  %s439_s2, 1024, %s778_s3, [#allocation3], %s654_s22, %s654_s22, %s655_s1  }
  0xf9   :  { %650 = dma.done.wait [#allocation3], 1024  }
  0xfa   :  { %651 = vsyncadd [#allocation3], 4294966272 }
  0xfb   :  { %448 = vsyncpa [#allocation3], 1 }

</bundles_post_ra>
